<compile_context>
chip_gen: v5e
topology: v5e:2x2
jax: 0.10.0
libtpu: 0.0.40
codegen_flags: <defaults>
</compile_context>

<pallas_src>
import jax
import jax.numpy as jnp
from jax.experimental import pallas as pl
from jax.experimental.pallas import tpu as pltpu


def _round_up(x, n):
    return ((x + n - 1) // n) * n


def _ffn_kernel(x_ref, w1_ref, b1_ref, w2_ref, b2_ref, o_ref, acc_ref):
    # x_ref: (TM, H)   w1_ref: (H, TP)   b1_ref: (1, TP)
    # w2_ref: (TP, H)  b2_ref: (1, H)    o_ref: (TM, H)   acc_ref: (TM, H) f32
    k = pl.program_id(1)

    @pl.when(k == 0)
    def _init():
        acc_ref[...] = jnp.zeros_like(acc_ref)

    # fc1 slice on the MXU: native operand dtype, f32 accumulation.
    h = jnp.dot(x_ref[...], w1_ref[...], preferred_element_type=jnp.float32)
    h = h + b1_ref[...].astype(jnp.float32)      # bias-add + ReLU in f32 on the VPU
    h = jnp.maximum(h, 0.0)

    # dropout: identity in eval mode.
    # TODO(synk): training-mode dropout (pltpu.prng_seed + prng_random_bits scaled mask).

    # fc2 partial product over this pf slice; cast back to weight dtype for native MXU rate.
    w2 = w2_ref[...]
    acc_ref[...] += jnp.dot(h.astype(w2.dtype), w2, preferred_element_type=jnp.float32)

    @pl.when(k == pl.num_programs(1) - 1)
    def _finalize():
        o_ref[...] = (acc_ref[...] + b2_ref[...].astype(jnp.float32)).astype(o_ref.dtype)


def _vmem_capacity_bytes():
    try:
        return int(pltpu.get_tpu_info().vmem_capacity_bytes)
    except Exception:
        return 64 * 1024 * 1024  # conservative: v7x per-TensorCore VMEM


def _footprint_bytes(tm, tp, hid, n_k, act_isz, w_isz):
    wbuf = 1 if n_k == 1 else 2            # invariant weight slices are single-buffered
    b = 0
    b += 2 * tm * hid * act_isz            # x tiles (double-buffered)
    b += 2 * tm * hid * act_isz            # out tiles (double-buffered)
    b += wbuf * hid * tp * w_isz           # w1 slice(s)
    b += wbuf * tp * hid * w_isz           # w2 slice(s)
    b += wbuf * max(tp, 128) * 4           # b1 slice(s)
    b += max(hid, 128) * 4                 # b2 (resident, single-buffered)
    b += tm * hid * 4                      # f32 accumulator scratch
    b += tm * tp * (4 + w_isz)             # live f32 intermediate + its cast copy
    return b


def _choose_tiles(m, hid, pf, act_isz, w_isz, budget):
    # Sublane quantum: 8 (f32), 16 (2-byte), 32 (1-byte).
    sub = 32 if act_isz == 1 else (16 if act_isz == 2 else 8)

    # M-tile candidates: prefer MXU-friendly 512 / 256, multiples of the sublane quantum.
    m_cap = _round_up(m, sub)
    tm_cands = []
    for t in (512, 256, 128, 64, 32, 16, 8):
        t = max(sub, (min(t, m_cap) // sub) * sub)
        if t not in tm_cands:
            tm_cands.append(t)

    # pf-tile candidates: full pf first (no reduction streaming), then 128-aligned divisors.
    tp_cands = [pf]
    if pf % 128 == 0:
        for t in (8192, 4096, 2048, 1024, 512, 256, 128):
            if t < pf and pf % t == 0:
                tp_cands.append(t)

    for tm in tm_cands:
        for tp in tp_cands:
            if _footprint_bytes(tm, tp, hid, pf // tp, act_isz, w_isz) <= budget:
                return tm, tp
    return tm_cands[-1], tp_cands[-1]  # smallest combination as a last resort


def positionwise_ffn(x, w1, b1, w2, b2, *, compute_dtype=None):
    """x: (batch, seq, hid). w1: (hid, pf), b1: (pf,), w2: (pf, hid), b2: (hid,)."""
    if compute_dtype is not None:
        x = x.astype(compute_dtype)
        w1 = w1.astype(compute_dtype)
        w2 = w2.astype(compute_dtype)

    batch, seq, hid = x.shape
    pf = w1.shape[1]
    m = batch * seq

    x2 = x.reshape(m, hid)
    b1_2 = b1.reshape(1, pf)
    b2_2 = b2.reshape(1, hid)

    act_isz = jnp.dtype(x.dtype).itemsize
    w_isz = jnp.dtype(w1.dtype).itemsize

    vmem_cap = _vmem_capacity_bytes()
    budget = min(int(vmem_cap * 0.8), 100 * 1024 * 1024)
    tm, tp = _choose_tiles(m, hid, pf, act_isz, w_isz, budget)
    n_i = pl.cdiv(m, tm)       # ragged last M tile handled by masked writeback (no host pad)
    n_k = pf // tp             # tp always divides pf by construction

    # Explicit scoped-VMEM limit: actual footprint + headroom, capped per generation.
    need = _footprint_bytes(tm, tp, hid, n_k, act_isz, w_isz)
    vmem_limit = int(min(min(int(vmem_cap * 0.85), 100 * 1024 * 1024),
                         max(int(need * 1.5) + (8 << 20), 16 << 20)))

    flops = 2 * 2 * m * hid * pf                       # two matmuls, 2*M*H*P each
    weight_bytes = 2 * hid * pf * w_isz + pf * 4 + hid * 4
    bytes_accessed = 2 * m * hid * act_isz + weight_bytes * (n_i if n_k > 1 else 1)
    cost = pl.CostEstimate(flops=int(flops), transcendentals=0,
                           bytes_accessed=int(bytes_accessed))

    def _make_specs(use_buffered):
        kw_w, kw_c = {}, {}
        if use_buffered:
            kw_c = dict(pipeline_mode=pl.Buffered(1))            # b2: constant index_map
            if n_k == 1:
                kw_w = dict(pipeline_mode=pl.Buffered(1))         # weights also invariant
        in_specs = [
            pl.BlockSpec((tm, hid), lambda i, k: (i, 0)),          # x tile (pipelined over M)
            pl.BlockSpec((hid, tp), lambda i, k: (0, k), **kw_w),  # w1 pf-slice
            pl.BlockSpec((1, tp), lambda i, k: (0, k), **kw_w),    # b1 pf-slice
            pl.BlockSpec((tp, hid), lambda i, k: (k, 0), **kw_w),  # w2 pf-slice
            pl.BlockSpec((1, hid), lambda i, k: (0, 0), **kw_c),   # b2 resident
        ]
        out_spec = pl.BlockSpec((tm, hid), lambda i, k: (i, 0))
        return in_specs, out_spec

    def _call(use_buffered):
        in_specs, out_spec = _make_specs(use_buffered)
        return pl.pallas_call(
            _ffn_kernel,
            out_shape=jax.ShapeDtypeStruct((m, hid), x.dtype),
            grid_spec=pltpu.PrefetchScalarGridSpec(
                num_scalar_prefetch=0,
                grid=(n_i, n_k),
                in_specs=in_specs,
                out_specs=out_spec,
                scratch_shapes=[pltpu.VMEM((tm, hid), jnp.float32)],
            ),
            compiler_params=pltpu.CompilerParams(
                # M tiles are independent -> shard across TensorCores on multi-TC parts;
                # the pf axis carries the accumulator -> must stay "arbitrary".
                dimension_semantics=("parallel", "arbitrary"),
                vmem_limit_bytes=vmem_limit,
            ),
            cost_estimate=cost,
        )(x2, w1, b1_2, w2, b2_2)

    try:
        out = _call(use_buffered=True)
    except Exception:  # fallback for jax versions without BlockSpec.pipeline_mode support
        out = _call(use_buffered=False)

    return out.reshape(batch, seq, hid)


def _reference(x, w1, b1, w2, b2):
    h = jnp.maximum(jnp.einsum("bsh,hp->bsp", x, w1) + b1, 0.0)
    return jnp.einsum("bsp,ph->bsh", h, w2) + b2


if __name__ == "__main__":
    # Small shapes implied by the module: batch=2, seq=8, hid_dim=32, pf_dim=64
    batch, seq, hid_dim, pf_dim = 2, 8, 32, 64

    key = jax.random.PRNGKey(0)
    kx, k1, k2, k3, k4 = jax.random.split(key, 5)

    x = jax.random.normal(kx, (batch, seq, hid_dim), dtype=jnp.float32)
    # Deterministic synthetic parameters (shapes from nn.Linear(hid, pf) / nn.Linear(pf, hid)),
    # stored as (in_features, out_features).
    w1 = jax.random.normal(k1, (hid_dim, pf_dim), dtype=jnp.float32) * 0.1
    b1 = jax.random.normal(k2, (pf_dim,), dtype=jnp.float32) * 0.1
    w2 = jax.random.normal(k3, (pf_dim, hid_dim), dtype=jnp.float32) * 0.1
    b2 = jax.random.normal(k4, (hid_dim,), dtype=jnp.float32) * 0.1

    y = positionwise_ffn(x, w1, b1, w2, b2)
    jax.block_until_ready(y)

    y_ref = _reference(x, w1, b1, w2, b2)
    assert y.shape == (batch, seq, hid_dim)
    assert jnp.allclose(y, y_ref, atol=1e-4, rtol=1e-4), "mismatch vs reference"

    print("KERNEL_OK")
</pallas_src>

<mosaic_0001>
module attributes {stable_mosaic.version = 11 : i64} {
  func.func @_ffn_kernel(%arg0: i32, %arg1: i32, %arg2: memref<16x32xf32, #tpu.memory_space<vmem>>, %arg3: memref<32x64xf32, #tpu.memory_space<vmem>>, %arg4: memref<1x64xf32, #tpu.memory_space<vmem>>, %arg5: memref<64x32xf32, #tpu.memory_space<vmem>>, %arg6: memref<1x32xf32, #tpu.memory_space<vmem>>, %arg7: memref<16x32xf32, #tpu.memory_space<vmem>>, %arg8: memref<16x32xf32, #tpu.memory_space<vmem>>) attributes {dimension_semantics = [#tpu.dimension_semantics<parallel>, #tpu.dimension_semantics<arbitrary>], iteration_bounds = array<i64: 1, 1>, scalar_prefetch = 0 : i64, scratch_operands = 1 : i64, tpu.core_type = #tpu.core_type<tc>, window_params = [{transform_indices = @transform_0, window_bounds = array<i64: 16, 32>}, {pipeline_mode = #tpu.pipeline_mode<synchronous>, transform_indices = @transform_1, window_bounds = array<i64: 32, 64>}, {pipeline_mode = #tpu.pipeline_mode<synchronous>, transform_indices = @transform_2, window_bounds = array<i64: 1, 64>}, {pipeline_mode = #tpu.pipeline_mode<synchronous>, transform_indices = @transform_3, window_bounds = array<i64: 64, 32>}, {pipeline_mode = #tpu.pipeline_mode<synchronous>, transform_indices = @transform_4, window_bounds = array<i64: 1, 32>}, {transform_indices = @transform_5, window_bounds = array<i64: 16, 32>}]} {
    %c0_i32 = arith.constant 0 : i32
    %0 = arith.cmpi eq, %arg1, %c0_i32 : i32
    %1 = arith.extui %0 : i1 to i32
    %c0_i32_0 = arith.constant 0 : i32
    %2 = arith.cmpi ne, %1, %c0_i32_0 : i32
    scf.if %2 {
      %cst_16 = arith.constant 0.000000e+00 : f32
      %19 = vector.broadcast %cst_16 : f32 to vector<16x32xf32>
      %c0_17 = arith.constant 0 : index
      %c0_18 = arith.constant 0 : index
      %20 = vector.load %arg8[%c0_17, %c0_18] : memref<16x32xf32, #tpu.memory_space<vmem>>, vector<16x32xf32>
      tpu.vector_store %arg8[%c0_17, %c0_18], %19 {strides = array<i32>} : memref<16x32xf32, #tpu.memory_space<vmem>>, vector<16x32xf32>,
    } else {
    }
    %c0 = arith.constant 0 : index
    %c0_1 = arith.constant 0 : index
    %3 = vector.load %arg2[%c0, %c0_1] : memref<16x32xf32, #tpu.memory_space<vmem>>, vector<16x32xf32>
    %c0_2 = arith.constant 0 : index
    %c0_3 = arith.constant 0 : index
    %4 = vector.load %arg3[%c0_2, %c0_3] : memref<32x64xf32, #tpu.memory_space<vmem>>, vector<32x64xf32>
    %cst = arith.constant dense<0.000000e+00> : vector<16x64xf32>
    %5 = tpu.matmul %3, %4, %cst {dimension_numbers = #tpu.dot_dimension_numbers<[1], [0], [0], [1], [0, 0, 1, 1], [], []>} : vector<16x32xf32>, vector<32x64xf32>, vector<16x64xf32> -> vector<16x64xf32>
    %c0_4 = arith.constant 0 : index
    %c0_5 = arith.constant 0 : index
    %6 = vector.load %arg4[%c0_4, %c0_5] : memref<1x64xf32, #tpu.memory_space<vmem>>, vector<1x64xf32>
    %7 = vector.broadcast %6 : vector<1x64xf32> to vector<16x64xf32>
    %8 = arith.addf %5, %7 : vector<16x64xf32>
    %cst_6 = arith.constant 0.000000e+00 : f32
    %9 = vector.broadcast %cst_6 : f32 to vector<16x64xf32>
    %10 = arith.maximumf %8, %9 : vector<16x64xf32>
    %c0_7 = arith.constant 0 : index
    %c0_8 = arith.constant 0 : index
    %11 = vector.load %arg5[%c0_7, %c0_8] : memref<64x32xf32, #tpu.memory_space<vmem>>, vector<64x32xf32>
    %c0_9 = arith.constant 0 : index
    %c0_10 = arith.constant 0 : index
    %12 = vector.load %arg8[%c0_9, %c0_10] : memref<16x32xf32, #tpu.memory_space<vmem>>, vector<16x32xf32>
    %cst_11 = arith.constant dense<0.000000e+00> : vector<16x32xf32>
    %13 = tpu.matmul %10, %11, %cst_11 {dimension_numbers = #tpu.dot_dimension_numbers<[1], [0], [0], [1], [0, 0, 1, 1], [], []>} : vector<16x64xf32>, vector<64x32xf32>, vector<16x32xf32> -> vector<16x32xf32>
    %14 = arith.addf %12, %13 : vector<16x32xf32>
    %c0_12 = arith.constant 0 : index
    %c0_13 = arith.constant 0 : index
    %15 = vector.load %arg8[%c0_12, %c0_13] : memref<16x32xf32, #tpu.memory_space<vmem>>, vector<16x32xf32>
    tpu.vector_store %arg8[%c0_12, %c0_13], %14 {strides = array<i32>} : memref<16x32xf32, #tpu.memory_space<vmem>>, vector<16x32xf32>,
    %c0_i32_14 = arith.constant 0 : i32
    %16 = arith.cmpi eq, %arg1, %c0_i32_14 : i32
    %17 = arith.extui %16 : i1 to i32
    %c0_i32_15 = arith.constant 0 : i32
    %18 = arith.cmpi ne, %17, %c0_i32_15 : i32
    scf.if %18 {
      %c0_16 = arith.constant 0 : index
      %c0_17 = arith.constant 0 : index
      %19 = vector.load %arg8[%c0_16, %c0_17] : memref<16x32xf32, #tpu.memory_space<vmem>>, vector<16x32xf32>
      %c0_18 = arith.constant 0 : index
      %c0_19 = arith.constant 0 : index
      %20 = vector.load %arg6[%c0_18, %c0_19] : memref<1x32xf32, #tpu.memory_space<vmem>>, vector<1x32xf32>
      %21 = vector.broadcast %20 : vector<1x32xf32> to vector<16x32xf32>
      %22 = arith.addf %19, %21 : vector<16x32xf32>
      %c0_20 = arith.constant 0 : index
      %c0_21 = arith.constant 0 : index
      %23 = vector.load %arg7[%c0_20, %c0_21] : memref<16x32xf32, #tpu.memory_space<vmem>>, vector<16x32xf32>
      tpu.vector_store %arg7[%c0_20, %c0_21], %22 {strides = array<i32>} : memref<16x32xf32, #tpu.memory_space<vmem>>, vector<16x32xf32>,
    } else {
    }
    return
  }
  func.func @transform_0(%arg0: i32, %arg1: i32) -> (i32, i32) {
    %c0_i32 = arith.constant 0 : i32
    %c0_i32_0 = arith.constant 0 : i32
    return %arg0, %c0_i32 : i32, i32
  }
  func.func @transform_1(%arg0: i32, %arg1: i32) -> (i32, i32) {
    %c0_i32 = arith.constant 0 : i32
    %c0_i32_0 = arith.constant 0 : i32
    return %c0_i32, %arg1 : i32, i32
  }
  func.func @transform_2(%arg0: i32, %arg1: i32) -> (i32, i32) {
    %c0_i32 = arith.constant 0 : i32
    %c0_i32_0 = arith.constant 0 : i32
    return %c0_i32, %arg1 : i32, i32
  }
  func.func @transform_3(%arg0: i32, %arg1: i32) -> (i32, i32) {
    %c0_i32 = arith.constant 0 : i32
    %c0_i32_0 = arith.constant 0 : i32
    return %arg1, %c0_i32 : i32, i32
  }
  func.func @transform_4(%arg0: i32, %arg1: i32) -> (i32, i32) {
    %c0_i32 = arith.constant 0 : i32
    %c0_i32_0 = arith.constant 0 : i32
    %c0_i32_1 = arith.constant 0 : i32
    return %c0_i32, %c0_i32_0 : i32, i32
  }
  func.func @transform_5(%arg0: i32, %arg1: i32) -> (i32, i32) {
    %c0_i32 = arith.constant 0 : i32
    %c0_i32_0 = arith.constant 0 : i32
    return %arg0, %c0_i32 : i32, i32
  }
}

module attributes {stable_mosaic.version = 11 : i64} {
  func.func @_ffn_kernel(%arg0: i32, %arg1: i32, %arg2: memref<16x32xf32, #tpu.memory_space<vmem>>, %arg3: memref<32x64xf32, #tpu.memory_space<vmem>>, %arg4: memref<1x64xf32, #tpu.memory_space<vmem>>, %arg5: memref<64x32xf32, #tpu.memory_space<vmem>>, %arg6: memref<1x32xf32, #tpu.memory_space<vmem>>, %arg7: memref<16x32xf32, #tpu.memory_space<vmem>>, %arg8: memref<16x32xf32, #tpu.memory_space<vmem>>) attributes {dimension_semantics = [#tpu.dimension_semantics<parallel>, #tpu.dimension_semantics<arbitrary>], iteration_bounds = array<i64: 1, 1>, scalar_prefetch = 0 : i64, scratch_operands = 1 : i64, tpu.core_type = #tpu.core_type<tc>, window_params = [{transform_indices = @transform_0, window_bounds = array<i64: 16, 32>}, {transform_indices = @transform_1, window_bounds = array<i64: 32, 64>}, {transform_indices = @transform_2, window_bounds = array<i64: 1, 64>}, {transform_indices = @transform_3, window_bounds = array<i64: 64, 32>}, {pipeline_mode = #tpu.pipeline_mode<synchronous>, transform_indices = @transform_4, window_bounds = array<i64: 1, 32>}, {transform_indices = @transform_5, window_bounds = array<i64: 16, 32>}]} {
    %c0_i32 = arith.constant 0 : i32
    %0 = arith.cmpi eq, %arg1, %c0_i32 : i32
    %1 = arith.extui %0 : i1 to i32
    %c0_i32_0 = arith.constant 0 : i32
    %2 = arith.cmpi ne, %1, %c0_i32_0 : i32
    scf.if %2 {
      %cst_16 = arith.constant 0.000000e+00 : f32
      %19 = vector.broadcast %cst_16 : f32 to vector<16x32xf32>
      %c0_17 = arith.constant 0 : index
      %c0_18 = arith.constant 0 : index
      %20 = vector.load %arg8[%c0_17, %c0_18] : memref<16x32xf32, #tpu.memory_space<vmem>>, vector<16x32xf32>
      tpu.vector_store %arg8[%c0_17, %c0_18], %19 {strides = array<i32>} : memref<16x32xf32, #tpu.memory_space<vmem>>, vector<16x32xf32>,
    } else {
    }
    %c0 = arith.constant 0 : index
    %c0_1 = arith.constant 0 : index
    %3 = vector.load %arg2[%c0, %c0_1] : memref<16x32xf32, #tpu.memory_space<vmem>>, vector<16x32xf32>
    %c0_2 = arith.constant 0 : index
    %c0_3 = arith.constant 0 : index
    %4 = vector.load %arg3[%c0_2, %c0_3] : memref<32x64xf32, #tpu.memory_space<vmem>>, vector<32x64xf32>
    %cst = arith.constant dense<0.000000e+00> : vector<16x64xf32>
    %5 = tpu.matmul %3, %4, %cst {dimension_numbers = #tpu.dot_dimension_numbers<[1], [0], [0], [1], [0, 0, 1, 1], [], []>} : vector<16x32xf32>, vector<32x64xf32>, vector<16x64xf32> -> vector<16x64xf32>
    %c0_4 = arith.constant 0 : index
    %c0_5 = arith.constant 0 : index
    %6 = vector.load %arg4[%c0_4, %c0_5] : memref<1x64xf32, #tpu.memory_space<vmem>>, vector<1x64xf32>
    %7 = vector.broadcast %6 : vector<1x64xf32> to vector<16x64xf32>
    %8 = arith.addf %5, %7 : vector<16x64xf32>
    %cst_6 = arith.constant 0.000000e+00 : f32
    %9 = vector.broadcast %cst_6 : f32 to vector<16x64xf32>
    %10 = arith.maximumf %8, %9 : vector<16x64xf32>
    %c0_7 = arith.constant 0 : index
    %c0_8 = arith.constant 0 : index
    %11 = vector.load %arg5[%c0_7, %c0_8] : memref<64x32xf32, #tpu.memory_space<vmem>>, vector<64x32xf32>
    %c0_9 = arith.constant 0 : index
    %c0_10 = arith.constant 0 : index
    %12 = vector.load %arg8[%c0_9, %c0_10] : memref<16x32xf32, #tpu.memory_space<vmem>>, vector<16x32xf32>
    %cst_11 = arith.constant dense<0.000000e+00> : vector<16x32xf32>
    %13 = tpu.matmul %10, %11, %cst_11 {dimension_numbers = #tpu.dot_dimension_numbers<[1], [0], [0], [1], [0, 0, 1, 1], [], []>} : vector<16x64xf32>, vector<64x32xf32>, vector<16x32xf32> -> vector<16x32xf32>
    %14 = arith.addf %12, %13 : vector<16x32xf32>
    %c0_12 = arith.constant 0 : index
    %c0_13 = arith.constant 0 : index
    %15 = vector.load %arg8[%c0_12, %c0_13] : memref<16x32xf32, #tpu.memory_space<vmem>>, vector<16x32xf32>
    tpu.vector_store %arg8[%c0_12, %c0_13], %14 {strides = array<i32>} : memref<16x32xf32, #tpu.memory_space<vmem>>, vector<16x32xf32>,
    %c0_i32_14 = arith.constant 0 : i32
    %16 = arith.cmpi eq, %arg1, %c0_i32_14 : i32
    %17 = arith.extui %16 : i1 to i32
    %c0_i32_15 = arith.constant 0 : i32
    %18 = arith.cmpi ne, %17, %c0_i32_15 : i32
    scf.if %18 {
      %c0_16 = arith.constant 0 : index
      %c0_17 = arith.constant 0 : index
      %19 = vector.load %arg8[%c0_16, %c0_17] : memref<16x32xf32, #tpu.memory_space<vmem>>, vector<16x32xf32>
      %c0_18 = arith.constant 0 : index
      %c0_19 = arith.constant 0 : index
      %20 = vector.load %arg6[%c0_18, %c0_19] : memref<1x32xf32, #tpu.memory_space<vmem>>, vector<1x32xf32>
      %21 = vector.broadcast %20 : vector<1x32xf32> to vector<16x32xf32>
      %22 = arith.addf %19, %21 : vector<16x32xf32>
      %c0_20 = arith.constant 0 : index
      %c0_21 = arith.constant 0 : index
      %23 = vector.load %arg7[%c0_20, %c0_21] : memref<16x32xf32, #tpu.memory_space<vmem>>, vector<16x32xf32>
      tpu.vector_store %arg7[%c0_20, %c0_21], %22 {strides = array<i32>} : memref<16x32xf32, #tpu.memory_space<vmem>>, vector<16x32xf32>,
    } else {
    }
    return
  }
  func.func @transform_0(%arg0: i32, %arg1: i32) -> (i32, i32) {
    %c0_i32 = arith.constant 0 : i32
    %c0_i32_0 = arith.constant 0 : i32
    return %arg0, %c0_i32 : i32, i32
  }
  func.func @transform_1(%arg0: i32, %arg1: i32) -> (i32, i32) {
    %c0_i32 = arith.constant 0 : i32
    %c0_i32_0 = arith.constant 0 : i32
    return %c0_i32, %arg1 : i32, i32
  }
  func.func @transform_2(%arg0: i32, %arg1: i32) -> (i32, i32) {
    %c0_i32 = arith.constant 0 : i32
    %c0_i32_0 = arith.constant 0 : i32
    return %c0_i32, %arg1 : i32, i32
  }
  func.func @transform_3(%arg0: i32, %arg1: i32) -> (i32, i32) {
    %c0_i32 = arith.constant 0 : i32
    %c0_i32_0 = arith.constant 0 : i32
    return %arg1, %c0_i32 : i32, i32
  }
  func.func @transform_4(%arg0: i32, %arg1: i32) -> (i32, i32) {
    %c0_i32 = arith.constant 0 : i32
    %c0_i32_0 = arith.constant 0 : i32
    %c0_i32_1 = arith.constant 0 : i32
    return %c0_i32, %c0_i32_0 : i32, i32
  }
  func.func @transform_5(%arg0: i32, %arg1: i32) -> (i32, i32) {
    %c0_i32 = arith.constant 0 : i32
    %c0_i32_0 = arith.constant 0 : i32
    return %arg0, %c0_i32 : i32, i32
  }
}

</mosaic_0001>

<bundles_post_ra>
// kernel: tpu_custom_call.1
= control target key start
LH: loop header
LB: loop body
LE: loop exit
PB: predicated region body
PF: predicated region fallthrough
CT: control target
= control target key end

     0   :  { %s286_s0 = inlined_call_operand.vmem [shape: f32[16,32], index: 0, kind: input, shape index: {}]   ;;  %s287_s1 = inlined_call_operand.vmem [shape: f32[32,64], index: 1, kind: input, shape index: {}]   ;;  %s288_s2 = inlined_call_operand.vmem [shape: f32[1,64], index: 2, kind: input, shape index: {}]   ;;  %s289_s3 = inlined_call_operand.vmem [shape: f32[64,32], index: 3, kind: input, shape index: {}]   ;;  %s290_s4 = inlined_call_operand.vmem [shape: f32[1,32], index: 4, kind: input, shape index: {}]   ;;  %s291_s5 = inlined_call_operand.hbm [shape: f32[16,32], index: 5, kind: output, shape index: {}]  }
   0x1   :  { %v33_v0 = vld [vmem:[%s287_s1 + $0x18] sm:$0xff]  ;;  %v32_v1 = vld [vmem:[%s287_s1 + $0x10] sm:$0xff]  ;;  %v31_v2 = vld [vmem:[%s287_s1 + $0x8] sm:$0xff] }
   0x2   :  { %149 = vmatpush.msra.mxu3 %v33_v0  ;;  %57 = vmatpush.msra.mxu0 %v33_v0  ;;  %v77_v3 = vld [vmem:[%s289_s3 + $0x38] sm:$0xff]  ;;  %v76_v4 = vld [vmem:[%s289_s3 + $0x30] sm:$0xff]  ;;  %v30_v5 = vld [vmem:[%s287_s1] sm:$0xff] }
   0x3   :  { %153 = vmatpush.msra.mxu2 %v77_v3  ;;  %95 = vmatpush.msra.mxu1 %v77_v3 }
   0x4   :  { %150 = vmatpush.msra.mxu3 %v32_v1  ;;  %58 = vmatpush.msra.mxu0 %v32_v1 }
   0x5   :  { %10 = vsyncpa [#allocation4], 0  ;;  %vm25_vm0 = vcmask 261120   ;;  %v29_v6 = vld [vmem:[%s286_s0 + $0x8] sm:$0xff]  ;;  %v28_v7 = vld [vmem:[%s286_s0] sm:$0xff]  ;;  %154 = vmatpush.msra.mxu2 %v76_v4  ;;  %96 = vmatpush.msra.mxu1 %v76_v4  ;;  %v193_v14 = vmov 0.0  }
   0x6   :  { %151 = vmatpush.msra.mxu3 %v31_v2  ;;  %59 = vmatpush.msra.mxu0 %v31_v2  ;;  %v75_v8 = vld [vmem:[%s289_s3 + $0x28] sm:$0xff]  ;;  %v74_v9 = vld [vmem:[%s289_s3 + $0x20] sm:$0xff]  ;;  %v73_v10 = vld [vmem:[%s289_s3 + $0x18] sm:$0xff]  ;;  %26 = vst.msk [vmem:[#allocation2] sm:$0xff] %vm25_vm0, %v193_v14  ;;  %vm80_vm1 = vcmask 523264   ;;  %s133_s25 = sshll.u32 %s291_s5, 4  ;;  %s134_s25 = int_to_ptr.hbm [resolvable:$true] %s133_s25 }
   0x7   :  { %155 = vmatpush.msra.mxu2 %v75_v8  ;;  %97 = vmatpush.msra.mxu1 %v75_v8  ;;  %v72_v11 = vld [vmem:[%s289_s3 + $0x10] sm:$0xff]  ;;  %v71_v12 = vld [vmem:[%s289_s3 + $0x8] sm:$0xff]  ;;  %v70_v13 = vld [vmem:[%s289_s3] sm:$0xff]  ;;  %27 = vst.msk [vmem:[#allocation2 + $0x8] sm:$0xff] %vm25_vm0, %v193_v14  ;;  %s196_s26 = smov 8  }
   0x8   :  { %152 = vmatpush.msra.mxu3 %v30_v5  ;;  %60 = vmatpush.msra.mxu0 %v30_v5  ;;  %v165_v15 = vld [vmem:[%s288_s2] ss:$0 sm:$0xff]  ;;  %s194_s2 = smov [#allocation3]  }
   0x9   :  { %146 = vmatmul.msk.f32.vlgmr.msra.gmra.mxu3 %vm25_vm0, %v29_v6  ;;  %145 = vmatmul.msk.f32.vlgmr.msra.gmra.mxu0 %vm25_vm0, %v28_v7  ;;  %v166_v25 = vld [vmem:[%s290_s4] ss:$0 sm:$0xff]  ;;  %s131_s22 = sshll.u32 %s194_s2, 4  ;;  %s195_s4 = smov 128   ;;  %s132_s22 = int_to_ptr.vmem [resolvable:$true] %s131_s22 }
   0xa   :  { %156 = vmatpush.msra.mxu2 %v74_v9  ;;  %98 = vmatpush.msra.mxu1 %v74_v9 }
   0xc   :  { %157 = vmatpush.msra.mxu2 %v73_v10  ;;  %99 = vmatpush.msra.mxu1 %v73_v10 }
   0xd   :  { %v78_v22 = vld [vmem:[#allocation2] sm:$0xff] }
   0xe   :  { %158 = vmatpush.msra.mxu2 %v72_v11  ;;  %100 = vmatpush.msra.mxu1 %v72_v11  ;;  %v79_v26 = vld [vmem:[#allocation2 + $0x8] sm:$0xff] }
  0x10   :  { %159 = vmatpush.msra.mxu2 %v71_v12  ;;  %101 = vmatpush.msra.mxu1 %v71_v12 }
  0x12   :  { %160 = vmatpush.msra.mxu2 %v70_v13  ;;  %102 = vmatpush.msra.mxu1 %v70_v13 }
  0x86   :  { %v62_v16 = vpop.f32.mrf.mxu0 }
  0x87   :  { %v63_v17 = vadd.f32 %v165_v15, %v62_v16 }
  0x89   :  { %v68_v18 = vmax.f32 %v63_v17, 0.0 }
  0x8b   :  { %147 = vmatmul.msk.f32.vlgmr.msra.gmra.mxu1 %vm80_vm1, %v68_v18 }
  0x8c   :  { %v65_v19 = vpop.f32.mrf.mxu3 }
  0x8d   :  { %v66_v20 = vadd.f32 %v165_v15, %v65_v19 }
  0x8f   :  { %v69_v21 = vmax.f32 %v66_v20, 0.0 }
  0x91   :  { %148 = vmatmul.msk.f32.vlgmr.msra.gmra.mxu2 %vm80_vm1, %v69_v21 }
 0x108   :  { %v104_v23 = vpop.f32.mrf.mxu1 }
 0x109   :  { %v110_v24 = vadd.f32 %v104_v23, %v78_v22 }
 0x10b   :  { %112 = vst.msk [vmem:[#allocation2] sm:$0xff] %vm25_vm0, %v110_v24 }
 0x112   :  { %v117_v27 = vld [vmem:[#allocation2] sm:$0xff] }
 0x113   :  { %v123_v28 = vadd.f32 %v166_v25, %v117_v27 }
 0x114   :  { %v107_v29 = vpop.f32.mrf.mxu2 }
 0x115   :  { %v111_v30 = vadd.f32 %v107_v29, %v79_v26  ;;  %125 = vst.msk [vmem:[#allocation3] sm:$0xff] %vm25_vm0, %v123_v28 }
 0x117   :  { %113 = vst.msk [vmem:[#allocation2 + $0x8] sm:$0xff] %vm25_vm0, %v111_v30 }
 0x11e   :  { %v118_v31 = vld [vmem:[#allocation2 + $0x8] sm:$0xff] }
 0x11f   :  { %v124_v32 = vadd.f32 %v166_v25, %v118_v31 }
 0x121   :  { %126 = vst.msk [vmem:[#allocation3 + $0x8] sm:$0xff] %vm25_vm0, %v124_v32 }
 0x122   :  { %139 = dma.vmem_to_hbm [thread:$0]  %s132_s22, 256, %s134_s25, [#allocation4], %s195_s4, %s195_s4, %s196_s26  }
 0x123   :  { %191 = dma.done.wait [#allocation4], 256  }
 0x124   :  { %192 = vsyncadd [#allocation4], 4294967040 }
 0x125   :  { %144 = vsyncpa [#allocation4], 1 }

// kernel: tpu_custom_call.1
= control target key start
LH: loop header
LB: loop body
LE: loop exit
PB: predicated region body
PF: predicated region fallthrough
CT: control target
= control target key end

     0   :  { %s286_s0 = inlined_call_operand.vmem [shape: f32[16,32], index: 0, kind: input, shape index: {}]   ;;  %s287_s1 = inlined_call_operand.vmem [shape: f32[32,64], index: 1, kind: input, shape index: {}]   ;;  %s288_s2 = inlined_call_operand.vmem [shape: f32[1,64], index: 2, kind: input, shape index: {}]   ;;  %s289_s3 = inlined_call_operand.vmem [shape: f32[64,32], index: 3, kind: input, shape index: {}]   ;;  %s290_s4 = inlined_call_operand.vmem [shape: f32[1,32], index: 4, kind: input, shape index: {}]   ;;  %s291_s5 = inlined_call_operand.hbm [shape: f32[16,32], index: 5, kind: output, shape index: {}]  }
   0x1   :  { %v33_v0 = vld [vmem:[%s287_s1 + $0x18] sm:$0xff]  ;;  %v32_v1 = vld [vmem:[%s287_s1 + $0x10] sm:$0xff]  ;;  %v31_v2 = vld [vmem:[%s287_s1 + $0x8] sm:$0xff] }
   0x2   :  { %149 = vmatpush.msra.mxu3 %v33_v0  ;;  %57 = vmatpush.msra.mxu0 %v33_v0  ;;  %v77_v3 = vld [vmem:[%s289_s3 + $0x38] sm:$0xff]  ;;  %v76_v4 = vld [vmem:[%s289_s3 + $0x30] sm:$0xff]  ;;  %v30_v5 = vld [vmem:[%s287_s1] sm:$0xff] }
   0x3   :  { %153 = vmatpush.msra.mxu2 %v77_v3  ;;  %95 = vmatpush.msra.mxu1 %v77_v3 }
   0x4   :  { %150 = vmatpush.msra.mxu3 %v32_v1  ;;  %58 = vmatpush.msra.mxu0 %v32_v1 }
   0x5   :  { %10 = vsyncpa [#allocation4], 0  ;;  %vm25_vm0 = vcmask 261120   ;;  %v29_v6 = vld [vmem:[%s286_s0 + $0x8] sm:$0xff]  ;;  %v28_v7 = vld [vmem:[%s286_s0] sm:$0xff]  ;;  %154 = vmatpush.msra.mxu2 %v76_v4  ;;  %96 = vmatpush.msra.mxu1 %v76_v4  ;;  %v193_v14 = vmov 0.0  }
   0x6   :  { %151 = vmatpush.msra.mxu3 %v31_v2  ;;  %59 = vmatpush.msra.mxu0 %v31_v2  ;;  %v75_v8 = vld [vmem:[%s289_s3 + $0x28] sm:$0xff]  ;;  %v74_v9 = vld [vmem:[%s289_s3 + $0x20] sm:$0xff]  ;;  %v73_v10 = vld [vmem:[%s289_s3 + $0x18] sm:$0xff]  ;;  %26 = vst.msk [vmem:[#allocation2] sm:$0xff] %vm25_vm0, %v193_v14  ;;  %vm80_vm1 = vcmask 523264   ;;  %s133_s25 = sshll.u32 %s291_s5, 4  ;;  %s134_s25 = int_to_ptr.hbm [resolvable:$true] %s133_s25 }
   0x7   :  { %155 = vmatpush.msra.mxu2 %v75_v8  ;;  %97 = vmatpush.msra.mxu1 %v75_v8  ;;  %v72_v11 = vld [vmem:[%s289_s3 + $0x10] sm:$0xff]  ;;  %v71_v12 = vld [vmem:[%s289_s3 + $0x8] sm:$0xff]  ;;  %v70_v13 = vld [vmem:[%s289_s3] sm:$0xff]  ;;  %27 = vst.msk [vmem:[#allocation2 + $0x8] sm:$0xff] %vm25_vm0, %v193_v14  ;;  %s196_s26 = smov 8  }
   0x8   :  { %152 = vmatpush.msra.mxu3 %v30_v5  ;;  %60 = vmatpush.msra.mxu0 %v30_v5  ;;  %v165_v15 = vld [vmem:[%s288_s2] ss:$0 sm:$0xff]  ;;  %s194_s2 = smov [#allocation3]  }
   0x9   :  { %146 = vmatmul.msk.f32.vlgmr.msra.gmra.mxu3 %vm25_vm0, %v29_v6  ;;  %145 = vmatmul.msk.f32.vlgmr.msra.gmra.mxu0 %vm25_vm0, %v28_v7  ;;  %v166_v25 = vld [vmem:[%s290_s4] ss:$0 sm:$0xff]  ;;  %s131_s22 = sshll.u32 %s194_s2, 4  ;;  %s195_s4 = smov 128   ;;  %s132_s22 = int_to_ptr.vmem [resolvable:$true] %s131_s22 }
   0xa   :  { %156 = vmatpush.msra.mxu2 %v74_v9  ;;  %98 = vmatpush.msra.mxu1 %v74_v9 }
   0xc   :  { %157 = vmatpush.msra.mxu2 %v73_v10  ;;  %99 = vmatpush.msra.mxu1 %v73_v10 }
   0xd   :  { %v78_v22 = vld [vmem:[#allocation2] sm:$0xff] }
   0xe   :  { %158 = vmatpush.msra.mxu2 %v72_v11  ;;  %100 = vmatpush.msra.mxu1 %v72_v11  ;;  %v79_v26 = vld [vmem:[#allocation2 + $0x8] sm:$0xff] }
  0x10   :  { %159 = vmatpush.msra.mxu2 %v71_v12  ;;  %101 = vmatpush.msra.mxu1 %v71_v12 }
  0x12   :  { %160 = vmatpush.msra.mxu2 %v70_v13  ;;  %102 = vmatpush.msra.mxu1 %v70_v13 }
  0x86   :  { %v62_v16 = vpop.f32.mrf.mxu0 }
  0x87   :  { %v63_v17 = vadd.f32 %v165_v15, %v62_v16 }
  0x89   :  { %v68_v18 = vmax.f32 %v63_v17, 0.0 }
  0x8b   :  { %147 = vmatmul.msk.f32.vlgmr.msra.gmra.mxu1 %vm80_vm1, %v68_v18 }
  0x8c   :  { %v65_v19 = vpop.f32.mrf.mxu3 }
  0x8d   :  { %v66_v20 = vadd.f32 %v165_v15, %v65_v19 }
  0x8f   :  { %v69_v21 = vmax.f32 %v66_v20, 0.0 }
  0x91   :  { %148 = vmatmul.msk.f32.vlgmr.msra.gmra.mxu2 %vm80_vm1, %v69_v21 }
 0x108   :  { %v104_v23 = vpop.f32.mrf.mxu1 }
 0x109   :  { %v110_v24 = vadd.f32 %v104_v23, %v78_v22 }
 0x10b   :  { %112 = vst.msk [vmem:[#allocation2] sm:$0xff] %vm25_vm0, %v110_v24 }
 0x112   :  { %v117_v27 = vld [vmem:[#allocation2] sm:$0xff] }
 0x113   :  { %v123_v28 = vadd.f32 %v166_v25, %v117_v27 }
 0x114   :  { %v107_v29 = vpop.f32.mrf.mxu2 }
 0x115   :  { %v111_v30 = vadd.f32 %v107_v29, %v79_v26  ;;  %125 = vst.msk [vmem:[#allocation3] sm:$0xff] %vm25_vm0, %v123_v28 }
 0x117   :  { %113 = vst.msk [vmem:[#allocation2 + $0x8] sm:$0xff] %vm25_vm0, %v111_v30 }
 0x11e   :  { %v118_v31 = vld [vmem:[#allocation2 + $0x8] sm:$0xff] }
 0x11f   :  { %v124_v32 = vadd.f32 %v166_v25, %v118_v31 }
 0x121   :  { %126 = vst.msk [vmem:[#allocation3 + $0x8] sm:$0xff] %vm25_vm0, %v124_v32 }
 0x122   :  { %139 = dma.vmem_to_hbm [thread:$0]  %s132_s22, 256, %s134_s25, [#allocation4], %s195_s4, %s195_s4, %s196_s26  }
 0x123   :  { %191 = dma.done.wait [#allocation4], 256  }
 0x124   :  { %192 = vsyncadd [#allocation4], 4294967040 }
 0x125   :  { %144 = vsyncpa [#allocation4], 1 }

</bundles_post_ra>
